<compile_context>
chip_gen: v5e
topology: v5e:2x2
jax: 0.10.0
libtpu: 0.0.40
codegen_flags: <defaults>
</compile_context>

<pallas_src>
import jax
import jax.numpy as jnp
from jax.experimental import pallas as pl
from jax.experimental.pallas import tpu as pltpu


# ---------------------------------------------------------------------------
# Fused kernel: (folded MCD + Linear1) -> LeakyReLU -> Linear2 -> SE -> sum -> fc
# One grid step over the whole flattened (B*C, L) slab; all operands live in VMEM.
# ---------------------------------------------------------------------------
def treeblock_kernel(x_ref, w1_ref, b1_ref, w2_ref, b2_ref, qpool_ref, psq_ref,
                     wse1_ref, bse1_ref, wse2_ref, bse2_ref, qind_ref, pex_ref,
                     wfc_ref, bfc_ref, o_ref):
    x = x_ref[...]                                                  # (R, L), R = TB*C rows

    # Batched per-IMF Linear1 (MCD conv already folded into w1): (R, K*H)
    h = jnp.dot(x, w1_ref[...], preferred_element_type=jnp.float32) + b1_ref[...]
    h = jnp.where(h > 0, h, 0.01 * h)                               # LeakyReLU

    # Batched per-IMF Linear2 via block-diagonal weight: (R, K*L)
    y = jnp.dot(h, w2_ref[...], preferred_element_type=jnp.float32) + b2_ref[...]

    # SE squeeze: per-IMF time average, then per-batch channel average -> (TB, K)
    sk = jnp.dot(y, qpool_ref[...], preferred_element_type=jnp.float32)   # (R, K)
    s = jnp.dot(psq_ref[...], sk, preferred_element_type=jnp.float32)     # (TB, K)

    # SE excitation MLP: ReLU -> sigmoid -> per-IMF gate (TB, K)
    hs = jnp.maximum(
        jnp.dot(s, wse1_ref[...], preferred_element_type=jnp.float32) + bse1_ref[...], 0.0)
    a = jax.nn.sigmoid(
        jnp.dot(hs, wse2_ref[...], preferred_element_type=jnp.float32) + bse2_ref[...])

    # Expand gate over time (q_ind) and back over channel rows (pex), excite y, then
    # (sum over IMFs + forecast_fc) collapse into one matmul against tile(wfc, (K, 1)).
    gate_b = jnp.dot(a, qind_ref[...], preferred_element_type=jnp.float32)   # (TB, K*L)
    gate = jnp.dot(pex_ref[...], gate_b, preferred_element_type=jnp.float32)  # (R, K*L)
    yw = y * gate
    out = jnp.dot(yw, wfc_ref[...], preferred_element_type=jnp.float32) + bfc_ref[...]
    o_ref[...] = out.astype(o_ref.dtype)                            # (R, O)


def treeblock_forward(fused, x):
    B, C, L = x.shape
    O = fused["wfc_rep"].shape[-1]
    x2 = x.reshape(B * C, L)                                        # flatten rows: b*C + c
    weights = (fused["w1_all"], fused["b1_all"], fused["w2_blk"], fused["b2_all"],
               fused["q_pool"], fused["p_sq"], fused["wse1"], fused["bse1"],
               fused["wse2"], fused["bse2"], fused["q_ind"], fused["p_ex"],
               fused["wfc_rep"], fused["bfc"])
    # Weights / pooling matrices: full-array blocks with a constant block index -> VMEM-resident.
    w_specs = [pl.BlockSpec(w.shape, lambda i: (0, 0)) for w in weights]
    out2 = pl.pallas_call(
        treeblock_kernel,
        out_shape=jax.ShapeDtypeStruct((B * C, O), x.dtype),
        grid=(1,),                                                  # whole batch in one step
        in_specs=[pl.BlockSpec((B * C, L), lambda i: (i, 0))] + w_specs,
        out_specs=pl.BlockSpec((B * C, O), lambda i: (i, 0)),
        compiler_params=pltpu.CompilerParams(dimension_semantics=("arbitrary",)),
    )(x2, *weights)
    return out2.reshape(B, C, O)


# ---------------------------------------------------------------------------
# One-time host-side weight folding (conv -> Linear1, block-diag Linear2, SE helpers,
# batch/channel pooling matrices).
# ---------------------------------------------------------------------------
def _conv_band_matrix(w3, L):
    """L x L matrix T such that (x @ T) equals the zero-padded 3-tap conv of x with w3."""
    t = jnp.arange(L)
    diff = t[:, None] - t[None, :] + 1             # tap index of x[t] inside output t'
    valid = (diff >= 0) & (diff <= 2)
    return jnp.where(valid, w3[jnp.clip(diff, 0, 2)], 0.0)


def fold_params(params, B, C):
    mcd_w, mcd_b = params["mcd_w"], params["mcd_b"]            # (K,3), (K,)
    w1, b1 = params["w1"], params["b1"]                        # (K,L,H), (K,1,H)
    w2, b2 = params["w2"], params["b2"]                        # (K,H,L), (K,1,L)
    K, L, H = w1.shape
    w1_eff, b1_eff = [], []
    for k in range(K):
        T_k = _conv_band_matrix(mcd_w[k], L)                   # (L, L)
        w1_eff.append(T_k @ w1[k])                             # conv folded into Linear1
        b1_eff.append(mcd_b[k] * jnp.sum(w1[k], axis=0, keepdims=True) + b1[k])
    w1_all = jnp.concatenate(w1_eff, axis=1)                   # (L, K*H)
    b1_all = jnp.concatenate(b1_eff, axis=1)                   # (1, K*H)
    w2_blk = jnp.zeros((K * H, K * L), w2.dtype)
    for k in range(K):
        w2_blk = w2_blk.at[k * H:(k + 1) * H, k * L:(k + 1) * L].set(w2[k])
    b2_all = jnp.concatenate([b2[k] for k in range(K)], axis=1)          # (1, K*L)
    eye_k = jnp.eye(K, dtype=w1.dtype)
    q_pool = jnp.kron(eye_k, jnp.ones((L, 1), w1.dtype) / L)   # (K*L, K) per-IMF time avg
    q_ind = jnp.kron(eye_k, jnp.ones((1, L), w1.dtype))        # (K, K*L) expand gate over time
    eye_b = jnp.eye(B, dtype=w1.dtype)
    p_sq = jnp.kron(eye_b, jnp.ones((1, C), w1.dtype) / C)     # (B, B*C) channel avg per batch
    p_ex = jnp.kron(eye_b, jnp.ones((C, 1), w1.dtype))         # (B*C, B) broadcast gate to rows
    wfc_rep = jnp.tile(params["wfc"], (K, 1))                  # (K*L, O) IMF-sum + fc fused
    return {
        "w1_all": w1_all, "b1_all": b1_all, "w2_blk": w2_blk, "b2_all": b2_all,
        "q_pool": q_pool, "q_ind": q_ind, "p_sq": p_sq, "p_ex": p_ex,
        "wfc_rep": wfc_rep,
        "wse1": params["wse1"], "bse1": params["bse1"],
        "wse2": params["wse2"], "bse2": params["bse2"], "bfc": params["bfc"],
    }


# ---------------------------------------------------------------------------
# Parameters + a pure-JAX reference of the unfused forward (for verification).
# ---------------------------------------------------------------------------
def init_params(key, C, L, H, O, K):
    ks = jax.random.split(key, 10)
    scale = 0.1
    return {
        "mcd_w": scale * jax.random.normal(ks[0], (K, 3), jnp.float32),
        "mcd_b": scale * jax.random.normal(ks[1], (K,), jnp.float32),
        "w1": scale * jax.random.normal(ks[2], (K, L, H), jnp.float32),
        "b1": scale * jax.random.normal(ks[3], (K, 1, H), jnp.float32),
        "w2": scale * jax.random.normal(ks[4], (K, H, L), jnp.float32),
        "b2": scale * jax.random.normal(ks[5], (K, 1, L), jnp.float32),
        "wse1": scale * jax.random.normal(ks[6], (K, K), jnp.float32),
        "bse1": jnp.zeros((1, K), jnp.float32),
        "wse2": scale * jax.random.normal(ks[7], (K, K), jnp.float32),
        "bse2": jnp.zeros((1, K), jnp.float32),
        "wfc": scale * jax.random.normal(ks[8], (L, O), jnp.float32),
        "bfc": scale * jax.random.normal(ks[9], (1, O), jnp.float32),
    }


def reference_forward(params, x):
    B, C, L = x.shape
    K = params["mcd_w"].shape[0]
    xpad = jnp.pad(x, ((0, 0), (0, 0), (1, 1)))
    y_list = []
    for k in range(K):
        x_imf = (params["mcd_w"][k, 0] * xpad[:, :, 0:L]
                 + params["mcd_w"][k, 1] * xpad[:, :, 1:L + 1]
                 + params["mcd_w"][k, 2] * xpad[:, :, 2:L + 2]
                 + params["mcd_b"][k])
        h = x_imf @ params["w1"][k] + params["b1"][k]
        h = jnp.where(h > 0, h, 0.01 * h)
        y_list.append(h @ params["w2"][k] + params["b2"][k])
    y = jnp.stack(y_list, axis=2)                               # (B, C, K, L)
    s = jnp.mean(y, axis=(1, 3))                                # (B, K)
    hs = jnp.maximum(s @ params["wse1"] + params["bse1"], 0.0)
    a = jax.nn.sigmoid(hs @ params["wse2"] + params["bse2"])
    ysum = jnp.sum(y * a[:, None, :, None], axis=2)             # (B, C, L)
    return ysum @ params["wfc"] + params["bfc"]                 # (B, C, O)


if __name__ == "__main__":
    B, C, L, H, O, K = 2, 4, 16, 32, 8, 3   # batch, input_dim, input_len, enc_hidden, output_len, K_IMP
    key = jax.random.PRNGKey(0)
    kx, kp = jax.random.split(key)
    x = jax.random.normal(kx, (B, C, L), jnp.float32)
    params = init_params(kp, C, L, H, O, K)

    fused = fold_params(params, B, C)       # one-time weight preprocessing (outside the hot path)
    y = jax.jit(treeblock_forward)(fused, x)
    jax.block_until_ready(y)

    assert y.shape == (B, C, O) and y.dtype == jnp.float32
    y_ref = reference_forward(params, x)
    assert float(jnp.max(jnp.abs(y - y_ref))) < 5e-2
    print("KERNEL_OK")
</pallas_src>

<mosaic_0001>
module attributes {stable_mosaic.version = 11 : i64} {
  func.func @treeblock_kernel(%arg0: i32, %arg1: memref<8x16xf32, #tpu.memory_space<vmem>>, %arg2: memref<16x96xf32, #tpu.memory_space<vmem>>, %arg3: memref<1x96xf32, #tpu.memory_space<vmem>>, %arg4: memref<96x48xf32, #tpu.memory_space<vmem>>, %arg5: memref<1x48xf32, #tpu.memory_space<vmem>>, %arg6: memref<48x3xf32, #tpu.memory_space<vmem>>, %arg7: memref<2x8xf32, #tpu.memory_space<vmem>>, %arg8: memref<3x3xf32, #tpu.memory_space<vmem>>, %arg9: memref<1x3xf32, #tpu.memory_space<vmem>>, %arg10: memref<3x3xf32, #tpu.memory_space<vmem>>, %arg11: memref<1x3xf32, #tpu.memory_space<vmem>>, %arg12: memref<3x48xf32, #tpu.memory_space<vmem>>, %arg13: memref<8x2xf32, #tpu.memory_space<vmem>>, %arg14: memref<48x8xf32, #tpu.memory_space<vmem>>, %arg15: memref<1x8xf32, #tpu.memory_space<vmem>>, %arg16: memref<8x8xf32, #tpu.memory_space<vmem>>) attributes {dimension_semantics = [#tpu.dimension_semantics<arbitrary>], iteration_bounds = array<i64: 1>, scalar_prefetch = 0 : i64, scratch_operands = 0 : i64, tpu.core_type = #tpu.core_type<tc>, window_params = [{transform_indices = @transform_0, window_bounds = array<i64: 8, 16>}, {pipeline_mode = #tpu.pipeline_mode<synchronous>, transform_indices = @transform_1, window_bounds = array<i64: 16, 96>}, {pipeline_mode = #tpu.pipeline_mode<synchronous>, transform_indices = @transform_2, window_bounds = array<i64: 1, 96>}, {pipeline_mode = #tpu.pipeline_mode<synchronous>, transform_indices = @transform_3, window_bounds = array<i64: 96, 48>}, {pipeline_mode = #tpu.pipeline_mode<synchronous>, transform_indices = @transform_4, window_bounds = array<i64: 1, 48>}, {pipeline_mode = #tpu.pipeline_mode<synchronous>, transform_indices = @transform_5, window_bounds = array<i64: 48, 3>}, {pipeline_mode = #tpu.pipeline_mode<synchronous>, transform_indices = @transform_6, window_bounds = array<i64: 2, 8>}, {pipeline_mode = #tpu.pipeline_mode<synchronous>, transform_indices = @transform_7, window_bounds = array<i64: 3, 3>}, {pipeline_mode = #tpu.pipeline_mode<synchronous>, transform_indices = @transform_8, window_bounds = array<i64: 1, 3>}, {pipeline_mode = #tpu.pipeline_mode<synchronous>, transform_indices = @transform_9, window_bounds = array<i64: 3, 3>}, {pipeline_mode = #tpu.pipeline_mode<synchronous>, transform_indices = @transform_10, window_bounds = array<i64: 1, 3>}, {pipeline_mode = #tpu.pipeline_mode<synchronous>, transform_indices = @transform_11, window_bounds = array<i64: 3, 48>}, {pipeline_mode = #tpu.pipeline_mode<synchronous>, transform_indices = @transform_12, window_bounds = array<i64: 8, 2>}, {pipeline_mode = #tpu.pipeline_mode<synchronous>, transform_indices = @transform_13, window_bounds = array<i64: 48, 8>}, {pipeline_mode = #tpu.pipeline_mode<synchronous>, transform_indices = @transform_14, window_bounds = array<i64: 1, 8>}, {transform_indices = @transform_15, window_bounds = array<i64: 8, 8>}]} {
    %c0 = arith.constant 0 : index
    %c0_0 = arith.constant 0 : index
    %0 = vector.load %arg1[%c0, %c0_0] : memref<8x16xf32, #tpu.memory_space<vmem>>, vector<8x16xf32>
    %c0_1 = arith.constant 0 : index
    %c0_2 = arith.constant 0 : index
    %1 = vector.load %arg2[%c0_1, %c0_2] : memref<16x96xf32, #tpu.memory_space<vmem>>, vector<16x96xf32>
    %cst = arith.constant dense<0.000000e+00> : vector<8x96xf32>
    %2 = tpu.matmul %0, %1, %cst {dimension_numbers = #tpu.dot_dimension_numbers<[1], [0], [0], [1], [0, 0, 1, 1], [], []>} : vector<8x16xf32>, vector<16x96xf32>, vector<8x96xf32> -> vector<8x96xf32>
    %c0_3 = arith.constant 0 : index
    %c0_4 = arith.constant 0 : index
    %3 = vector.load %arg3[%c0_3, %c0_4] : memref<1x96xf32, #tpu.memory_space<vmem>>, vector<1x96xf32>
    %4 = vector.broadcast %3 : vector<1x96xf32> to vector<8x96xf32>
    %5 = arith.addf %2, %4 : vector<8x96xf32>
    %cst_5 = arith.constant 0.000000e+00 : f32
    %6 = vector.broadcast %cst_5 : f32 to vector<8x96xf32>
    %7 = arith.cmpf ogt, %5, %6 : vector<8x96xf32>
    %cst_6 = arith.constant 0.00999999977 : f32
    %8 = vector.broadcast %cst_6 : f32 to vector<8x96xf32>
    %9 = arith.mulf %8, %5 : vector<8x96xf32>
    %10 = arith.select %7, %5, %9 : vector<8x96xi1>, vector<8x96xf32>
    %c0_7 = arith.constant 0 : index
    %c0_8 = arith.constant 0 : index
    %11 = vector.load %arg4[%c0_7, %c0_8] : memref<96x48xf32, #tpu.memory_space<vmem>>, vector<96x48xf32>
    %cst_9 = arith.constant dense<0.000000e+00> : vector<8x48xf32>
    %12 = tpu.matmul %10, %11, %cst_9 {dimension_numbers = #tpu.dot_dimension_numbers<[1], [0], [0], [1], [0, 0, 1, 1], [], []>} : vector<8x96xf32>, vector<96x48xf32>, vector<8x48xf32> -> vector<8x48xf32>
    %c0_10 = arith.constant 0 : index
    %c0_11 = arith.constant 0 : index
    %13 = vector.load %arg5[%c0_10, %c0_11] : memref<1x48xf32, #tpu.memory_space<vmem>>, vector<1x48xf32>
    %14 = vector.broadcast %13 : vector<1x48xf32> to vector<8x48xf32>
    %15 = arith.addf %12, %14 : vector<8x48xf32>
    %c0_12 = arith.constant 0 : index
    %c0_13 = arith.constant 0 : index
    %16 = vector.load %arg6[%c0_12, %c0_13] : memref<48x3xf32, #tpu.memory_space<vmem>>, vector<48x3xf32>
    %cst_14 = arith.constant dense<0.000000e+00> : vector<8x3xf32>
    %17 = tpu.matmul %15, %16, %cst_14 {dimension_numbers = #tpu.dot_dimension_numbers<[1], [0], [0], [1], [0, 0, 1, 1], [], []>} : vector<8x48xf32>, vector<48x3xf32>, vector<8x3xf32> -> vector<8x3xf32>
    %c0_15 = arith.constant 0 : index
    %c0_16 = arith.constant 0 : index
    %18 = vector.load %arg7[%c0_15, %c0_16] : memref<2x8xf32, #tpu.memory_space<vmem>>, vector<2x8xf32>
    %cst_17 = arith.constant dense<0.000000e+00> : vector<2x3xf32>
    %19 = tpu.matmul %18, %17, %cst_17 {dimension_numbers = #tpu.dot_dimension_numbers<[1], [0], [0], [1], [0, 0, 1, 1], [], []>} : vector<2x8xf32>, vector<8x3xf32>, vector<2x3xf32> -> vector<2x3xf32>
    %c0_18 = arith.constant 0 : index
    %c0_19 = arith.constant 0 : index
    %20 = vector.load %arg8[%c0_18, %c0_19] : memref<3x3xf32, #tpu.memory_space<vmem>>, vector<3x3xf32>
    %cst_20 = arith.constant dense<0.000000e+00> : vector<2x3xf32>
    %21 = tpu.matmul %19, %20, %cst_20 {dimension_numbers = #tpu.dot_dimension_numbers<[1], [0], [0], [1], [0, 0, 1, 1], [], []>} : vector<2x3xf32>, vector<3x3xf32>, vector<2x3xf32> -> vector<2x3xf32>
    %c0_21 = arith.constant 0 : index
    %c0_22 = arith.constant 0 : index
    %22 = vector.load %arg9[%c0_21, %c0_22] : memref<1x3xf32, #tpu.memory_space<vmem>>, vector<1x3xf32>
    %23 = vector.broadcast %22 : vector<1x3xf32> to vector<2x3xf32>
    %24 = arith.addf %21, %23 : vector<2x3xf32>
    %cst_23 = arith.constant 0.000000e+00 : f32
    %25 = vector.broadcast %cst_23 : f32 to vector<2x3xf32>
    %26 = arith.maximumf %24, %25 : vector<2x3xf32>
    %c0_24 = arith.constant 0 : index
    %c0_25 = arith.constant 0 : index
    %27 = vector.load %arg10[%c0_24, %c0_25] : memref<3x3xf32, #tpu.memory_space<vmem>>, vector<3x3xf32>
    %cst_26 = arith.constant dense<0.000000e+00> : vector<2x3xf32>
    %28 = tpu.matmul %26, %27, %cst_26 {dimension_numbers = #tpu.dot_dimension_numbers<[1], [0], [0], [1], [0, 0, 1, 1], [], []>} : vector<2x3xf32>, vector<3x3xf32>, vector<2x3xf32> -> vector<2x3xf32>
    %c0_27 = arith.constant 0 : index
    %c0_28 = arith.constant 0 : index
    %29 = vector.load %arg11[%c0_27, %c0_28] : memref<1x3xf32, #tpu.memory_space<vmem>>, vector<1x3xf32>
    %30 = vector.broadcast %29 : vector<1x3xf32> to vector<2x3xf32>
    %31 = arith.addf %28, %30 : vector<2x3xf32>
    %32 = arith.negf %31 : vector<2x3xf32>
    %33 = math.exp %32 : vector<2x3xf32>
    %cst_29 = arith.constant 1.000000e+00 : f32
    %34 = vector.broadcast %cst_29 : f32 to vector<2x3xf32>
    %35 = arith.addf %34, %33 : vector<2x3xf32>
    %36 = arith.divf %34, %35 : vector<2x3xf32>
    %c0_30 = arith.constant 0 : index
    %c0_31 = arith.constant 0 : index
    %37 = vector.load %arg12[%c0_30, %c0_31] : memref<3x48xf32, #tpu.memory_space<vmem>>, vector<3x48xf32>
    %cst_32 = arith.constant dense<0.000000e+00> : vector<2x48xf32>
    %38 = tpu.matmul %36, %37, %cst_32 {dimension_numbers = #tpu.dot_dimension_numbers<[1], [0], [0], [1], [0, 0, 1, 1], [], []>} : vector<2x3xf32>, vector<3x48xf32>, vector<2x48xf32> -> vector<2x48xf32>
    %c0_33 = arith.constant 0 : index
    %c0_34 = arith.constant 0 : index
    %39 = vector.load %arg13[%c0_33, %c0_34] : memref<8x2xf32, #tpu.memory_space<vmem>>, vector<8x2xf32>
    %cst_35 = arith.constant dense<0.000000e+00> : vector<8x48xf32>
    %40 = tpu.matmul %39, %38, %cst_35 {dimension_numbers = #tpu.dot_dimension_numbers<[1], [0], [0], [1], [0, 0, 1, 1], [], []>} : vector<8x2xf32>, vector<2x48xf32>, vector<8x48xf32> -> vector<8x48xf32>
    %41 = arith.mulf %15, %40 : vector<8x48xf32>
    %c0_36 = arith.constant 0 : index
    %c0_37 = arith.constant 0 : index
    %42 = vector.load %arg14[%c0_36, %c0_37] : memref<48x8xf32, #tpu.memory_space<vmem>>, vector<48x8xf32>
    %cst_38 = arith.constant dense<0.000000e+00> : vector<8x8xf32>
    %43 = tpu.matmul %41, %42, %cst_38 {dimension_numbers = #tpu.dot_dimension_numbers<[1], [0], [0], [1], [0, 0, 1, 1], [], []>} : vector<8x48xf32>, vector<48x8xf32>, vector<8x8xf32> -> vector<8x8xf32>
    %c0_39 = arith.constant 0 : index
    %c0_40 = arith.constant 0 : index
    %44 = vector.load %arg15[%c0_39, %c0_40] : memref<1x8xf32, #tpu.memory_space<vmem>>, vector<1x8xf32>
    %45 = vector.broadcast %44 : vector<1x8xf32> to vector<8x8xf32>
    %46 = arith.addf %43, %45 : vector<8x8xf32>
    %c0_41 = arith.constant 0 : index
    %c0_42 = arith.constant 0 : index
    %47 = vector.load %arg16[%c0_41, %c0_42] : memref<8x8xf32, #tpu.memory_space<vmem>>, vector<8x8xf32>
    tpu.vector_store %arg16[%c0_41, %c0_42], %46 {strides = array<i32>} : memref<8x8xf32, #tpu.memory_space<vmem>>, vector<8x8xf32>,
    return
  }
  func.func @transform_0(%arg0: i32) -> (i32, i32) {
    %c0_i32 = arith.constant 0 : i32
    %c0_i32_0 = arith.constant 0 : i32
    return %arg0, %c0_i32 : i32, i32
  }
  func.func @transform_1(%arg0: i32) -> (i32, i32) {
    %c0_i32 = arith.constant 0 : i32
    %c0_i32_0 = arith.constant 0 : i32
    %c0_i32_1 = arith.constant 0 : i32
    return %c0_i32, %c0_i32_0 : i32, i32
  }
  func.func @transform_2(%arg0: i32) -> (i32, i32) {
    %c0_i32 = arith.constant 0 : i32
    %c0_i32_0 = arith.constant 0 : i32
    %c0_i32_1 = arith.constant 0 : i32
    return %c0_i32, %c0_i32_0 : i32, i32
  }
  func.func @transform_3(%arg0: i32) -> (i32, i32) {
    %c0_i32 = arith.constant 0 : i32
    %c0_i32_0 = arith.constant 0 : i32
    %c0_i32_1 = arith.constant 0 : i32
    return %c0_i32, %c0_i32_0 : i32, i32
  }
  func.func @transform_4(%arg0: i32) -> (i32, i32) {
    %c0_i32 = arith.constant 0 : i32
    %c0_i32_0 = arith.constant 0 : i32
    %c0_i32_1 = arith.constant 0 : i32
    return %c0_i32, %c0_i32_0 : i32, i32
  }
  func.func @transform_5(%arg0: i32) -> (i32, i32) {
    %c0_i32 = arith.constant 0 : i32
    %c0_i32_0 = arith.constant 0 : i32
    %c0_i32_1 = arith.constant 0 : i32
    return %c0_i32, %c0_i32_0 : i32, i32
  }
  func.func @transform_6(%arg0: i32) -> (i32, i32) {
    %c0_i32 = arith.constant 0 : i32
    %c0_i32_0 = arith.constant 0 : i32
    %c0_i32_1 = arith.constant 0 : i32
    return %c0_i32, %c0_i32_0 : i32, i32
  }
  func.func @transform_7(%arg0: i32) -> (i32, i32) {
    %c0_i32 = arith.constant 0 : i32
    %c0_i32_0 = arith.constant 0 : i32
    %c0_i32_1 = arith.constant 0 : i32
    return %c0_i32, %c0_i32_0 : i32, i32
  }
  func.func @transform_8(%arg0: i32) -> (i32, i32) {
    %c0_i32 = arith.constant 0 : i32
    %c0_i32_0 = arith.constant 0 : i32
    %c0_i32_1 = arith.constant 0 : i32
    return %c0_i32, %c0_i32_0 : i32, i32
  }
  func.func @transform_9(%arg0: i32) -> (i32, i32) {
    %c0_i32 = arith.constant 0 : i32
    %c0_i32_0 = arith.constant 0 : i32
    %c0_i32_1 = arith.constant 0 : i32
    return %c0_i32, %c0_i32_0 : i32, i32
  }
  func.func @transform_10(%arg0: i32) -> (i32, i32) {
    %c0_i32 = arith.constant 0 : i32
    %c0_i32_0 = arith.constant 0 : i32
    %c0_i32_1 = arith.constant 0 : i32
    return %c0_i32, %c0_i32_0 : i32, i32
  }
  func.func @transform_11(%arg0: i32) -> (i32, i32) {
    %c0_i32 = arith.constant 0 : i32
    %c0_i32_0 = arith.constant 0 : i32
    %c0_i32_1 = arith.constant 0 : i32
    return %c0_i32, %c0_i32_0 : i32, i32
  }
  func.func @transform_12(%arg0: i32) -> (i32, i32) {
    %c0_i32 = arith.constant 0 : i32
    %c0_i32_0 = arith.constant 0 : i32
    %c0_i32_1 = arith.constant 0 : i32
    return %c0_i32, %c0_i32_0 : i32, i32
  }
  func.func @transform_13(%arg0: i32) -> (i32, i32) {
    %c0_i32 = arith.constant 0 : i32
    %c0_i32_0 = arith.constant 0 : i32
    %c0_i32_1 = arith.constant 0 : i32
    return %c0_i32, %c0_i32_0 : i32, i32
  }
  func.func @transform_14(%arg0: i32) -> (i32, i32) {
    %c0_i32 = arith.constant 0 : i32
    %c0_i32_0 = arith.constant 0 : i32
    %c0_i32_1 = arith.constant 0 : i32
    return %c0_i32, %c0_i32_0 : i32, i32
  }
  func.func @transform_15(%arg0: i32) -> (i32, i32) {
    %c0_i32 = arith.constant 0 : i32
    %c0_i32_0 = arith.constant 0 : i32
    return %arg0, %c0_i32 : i32, i32
  }
}

</mosaic_0001>

<bundles_post_ra>
// kernel: treeblock_forward.1
= control target key start
LH: loop header
LB: loop body
LE: loop exit
PB: predicated region body
PF: predicated region fallthrough
CT: control target
= control target key end

     0   :  { %vm58_vm0 = vcmask 130048   ;;  %s627_s0 = inlined_call_operand.vmem [shape: f32[8,16], index: 0, kind: input, shape index: {}]   ;;  %s628_s1 = inlined_call_operand.vmem [shape: f32[16,96], index: 1, kind: input, shape index: {}]   ;;  %s629_s2 = inlined_call_operand.vmem [shape: f32[1,96], index: 2, kind: input, shape index: {}]   ;;  %s630_s3 = inlined_call_operand.vmem [shape: f32[96,48], index: 3, kind: input, shape index: {}]   ;;  %s631_s4 = inlined_call_operand.vmem [shape: f32[1,48], index: 4, kind: input, shape index: {}]   ;;  %s632_s5 = inlined_call_operand.vmem [shape: f32[48,3], index: 5, kind: input, shape index: {}]   ;;  %s633_s6 = inlined_call_operand.vmem [shape: f32[2,8], index: 6, kind: input, shape index: {}]   ;;  %s634_s7 = inlined_call_operand.vmem [shape: f32[3,3], index: 7, kind: input, shape index: {}]   ;;  %s635_s8 = inlined_call_operand.vmem [shape: f32[1,3], index: 8, kind: input, shape index: {}]   ;;  %s636_s9 = inlined_call_operand.vmem [shape: f32[3,3], index: 9, kind: input, shape index: {}]   ;;  %s637_s10 = inlined_call_operand.vmem [shape: f32[1,3], index: 10, kind: input, shape index: {}]   ;;  %s638_s11 = inlined_call_operand.vmem [shape: f32[3,48], index: 11, kind: input, shape index: {}]   ;;  %s639_s12 = inlined_call_operand.vmem [shape: f32[8,2], index: 12, kind: input, shape index: {}]   ;;  %s640_s13 = inlined_call_operand.vmem [shape: f32[48,8], index: 13, kind: input, shape index: {}]   ;;  %s641_s14 = inlined_call_operand.vmem [shape: f32[1,8], index: 14, kind: input, shape index: {}]   ;;  %s642_s15 = inlined_call_operand.hbm [shape: f32[8,8], index: 15, kind: output, shape index: {}]  }
   0x1   :  { %v53_v0 = vld [vmem:[%s628_s1 + $0x8] sm:$0xff]  ;;  %v52_v1 = vld [vmem:[%s628_s1] sm:$0xff]  ;;  %v96_v3 = vld [vmem:[%s630_s3 + $0x58] sm:$0xff] }
   0x2   :  { %76 = vmatpush.msra.mxu0 %v53_v0  ;;  %v51_v2 = vld [vmem:[%s627_s0] sm:$0xff]  ;;  %v95_v4 = vld [vmem:[%s630_s3 + $0x50] sm:$0xff]  ;;  %109 = vmatpush.msra.mxu1 %v96_v3  ;;  %v94_v5 = vld [vmem:[%s630_s3 + $0x48] sm:$0xff] }
   0x3   :  { %v93_v6 = vld [vmem:[%s630_s3 + $0x40] sm:$0xff] }
   0x4   :  { %77 = vmatpush.msra.mxu0 %v52_v1  ;;  %110 = vmatpush.msra.mxu1 %v95_v4 }
   0x5   :  { %371 = vmatmul.msk.f32.vlgmr.msra.gmra.mxu0 %vm58_vm0, %v51_v2 }
   0x6   :  { %111 = vmatpush.msra.mxu1 %v94_v5 }
   0x7   :  { %20 = vsyncpa [#allocation3], 0  ;;  %v92_v7 = vld [vmem:[%s630_s3 + $0x38] sm:$0xff]  ;;  %v91_v8 = vld [vmem:[%s630_s3 + $0x30] sm:$0xff]  ;;  %vm101_vm2 = vcmask 785408   ;;  %vm131_vm3 = vcmask 392192  }
   0x8   :  { %112 = vmatpush.msra.mxu1 %v93_v6  ;;  %v90_v9 = vld [vmem:[%s630_s3 + $0x28] sm:$0xff]  ;;  %v89_v10 = vld [vmem:[%s630_s3 + $0x20] sm:$0xff]  ;;  %v88_v11 = vld [vmem:[%s630_s3 + $0x18] sm:$0xff]  ;;  %vm156_vm4 = vcmask 64512   ;;  %vm189_vm5 = vcmask 1042432   ;;  %vm185_vm6 = vcmask 23552  }
   0x9   :  { %v87_v12 = vld [vmem:[%s630_s3 + $0x10] sm:$0xff]  ;;  %v86_v13 = vld [vmem:[%s630_s3 + $0x8] sm:$0xff]  ;;  %v85_v14 = vld [vmem:[%s630_s3] sm:$0xff]  ;;  %vm296_vm11 = vcmask 1041408   ;;  %vm292_vm12 = vcmask 15360  }
   0xa   :  { %113 = vmatpush.msra.mxu1 %v92_v7  ;;  %v130_v15 = vld [vmem:[%s632_s5 + $0x28] sm:$0xff]  ;;  %v129_v16 = vld [vmem:[%s632_s5 + $0x20] sm:$0xff]  ;;  %v128_v17 = vld [vmem:[%s632_s5 + $0x18] sm:$0xff] }
   0xb   :  { %145 = vmatpush.msra.mxu2 %v130_v15  ;;  %v127_v18 = vld [vmem:[%s632_s5 + $0x10] sm:$0xff]  ;;  %v386_v19 = vld [vmem:[%s629_s2] ss:$0 sm:$0xff]  ;;  %v126_v24 = vld [vmem:[%s632_s5 + $0x8] sm:$0xff]  ;;  %s421_s2 = smov [#allocation2]  }
   0xc   :  { %114 = vmatpush.msra.mxu1 %v91_v8  ;;  %v125_v25 = vld [vmem:[%s632_s5] sm:$0xff]  ;;  %v326_v55 = vld [vmem:[%s640_s13 + $0x28] sm:$0xff]  ;;  %v324_v57 = vld [vmem:[%s640_s13 + $0x18] sm:$0xff]  ;;  %s360_s29 = sshll.u32 %s421_s2, 4  ;;  %s361_s29 = int_to_ptr.vmem [resolvable:$true] %s360_s29 }
   0xd   :  { %146 = vmatpush.msra.mxu2 %v129_v16  ;;  %v387_v26 = vld [vmem:[%s631_s4] ss:$0 sm:$0xff]  ;;  %v323_v58 = vld [vmem:[%s640_s13 + $0x10] sm:$0xff]  ;;  %v322_v61 = vld [vmem:[%s640_s13 + $0x8] sm:$0xff]  ;;  %s362_s4 = sshll.u32 %s642_s15, 4  ;;  %s363_s4 = int_to_ptr.hbm [resolvable:$true] %s362_s4 }
   0xe   :  { %115 = vmatpush.msra.mxu1 %v90_v9  ;;  %v155_v29 = vld [vmem:[%s633_s6] sm:$0x3] }
   0xf   :  { %147 = vmatpush.msra.mxu2 %v128_v17  ;;  %v180_v31 = vld [vmem:[%s634_s7] sm:$0x7] }
  0x10   :  { %116 = vmatpush.msra.mxu1 %v89_v10  ;;  %v214_v33 = vld [vmem:[%s636_s9] sm:$0x7] }
  0x11   :  { %148 = vmatpush.msra.mxu2 %v127_v18  ;;  %377 = vmatpush.msk.msrb.mxu0 %vm189_vm5, %v214_v33  ;;  %v388_v34 = vld [vmem:[%s635_s8] ss:$0 sm:$0xff] }
  0x12   :  { %117 = vmatpush.msra.mxu1 %v88_v11  ;;  %v264_v38 = vld [vmem:[%s638_s11] sm:$0x7] }
  0x13   :  { %149 = vmatpush.msra.mxu2 %v126_v24  ;;  %v389_v39 = vld [vmem:[%s637_s10] ss:$0 sm:$0xff] }
  0x14   :  { %118 = vmatpush.msra.mxu1 %v87_v12  ;;  %v325_v56 = vld [vmem:[%s640_s13 + $0x20] sm:$0xff] }
  0x15   :  { %150 = vmatpush.msra.mxu2 %v125_v25  ;;  %v291_v59 = vld [vmem:[%s639_s12] sm:$0xff] }
  0x16   :  { %119 = vmatpush.msra.mxu1 %v86_v13  ;;  %v321_v62 = vld [vmem:[%s640_s13] sm:$0xff] }
  0x17   :  { %344 = vmatpush.msrb.mxu2 %v326_v55  ;;  %v390_v1 = vld [vmem:[%s641_s14] ss:$0 sm:$0xff] }
  0x18   :  { %120 = vmatpush.msra.mxu1 %v85_v14 }
  0x19   :  { %345 = vmatpush.msrb.mxu2 %v325_v56 }
  0x1b   :  { %346 = vmatpush.msrb.mxu2 %v324_v57 }
  0x1d   :  { %347 = vmatpush.msrb.mxu2 %v323_v58 }
  0x1f   :  { %348 = vmatpush.msrb.mxu2 %v322_v61 }
  0x21   :  { %349 = vmatpush.msrb.mxu2 %v321_v62 }
  0x82   :  { %v79_v20 = vpop.f32.mrf.mxu0 }
  0x83   :  { %v80_v21 = vadd.f32 %v386_v19, %v79_v20 }
  0x85   :  { %v83_v22 = vmul.f32 0.01, %v80_v21  ;;  %vm82_vm1 = vcmp.gt.f32.partialorder %v80_v21, 0.0 }
  0x87   :  { %v84_v23 = vsel %vm82_vm1, %v80_v21, %v83_v22 }
  0x88   :  { %372 = vmatmul.msk.f32.vlgmr.msra.gmra.mxu1 %vm101_vm2, %v84_v23 }
 0x105   :  { %v122_v27 = vpop.f32.mrf.mxu1 }
 0x106   :  { %v571_v28 = vadd.f32 %v387_v26, %v122_v27 }
 0x108   :  { %373 = vmatmul.msk.f32.vlgmr.msra.gmra.mxu2 %vm131_vm3, %v571_v28 }
 0x18b   :  { %v152_v30 = vpop.f32.mrf.mxu2 }
 0x18c   :  { %175 = vmatpush.msra.mxu3 %v152_v30 }
 0x18d   :  { %374 = vmatmul.msk.f32.vlgmr.msra.gmra.mxu3 %vm156_vm4, %v155_v29 }
 0x18e   :  { %375 = vmatpush.msk.msrb.mxu3 %vm189_vm5, %v180_v31 }
 0x190   :  { %380 = vmatpush.msk.msra.mxu3 %vm189_vm5, %v264_v38 }
 0x210   :  { %v177_v32 = vpop.f32.mrf.mxu3 }
 0x211   :  { %376 = vmatmul.msk.f32.vlgmr.msrb.gmra.mxu3 %vm185_vm6, %v177_v32 }
 0x294   :  { %v210_v35 = vpop.f32.mrf.mxu3 }
 0x295   :  { %v211_v36 = vadd.f32 %v388_v34, %v210_v35 }
 0x297   :  { %v213_v37 = vmax.f32 %v211_v36, 0.0 }
 0x299   :  { %378 = vmatmul.msk.f32.vlgmr.msrb.gmra.mxu0 %vm185_vm6, %v213_v37 }
 0x316   :  { %v242_v40 = vpop.f32.mrf.mxu0 }
 0x317   :  { %v243_v41 = vadd.f32 %v389_v39, %v242_v40 }
 0x319   :  { %v379_v42 = vmul.f32 -1.442695, %v243_v41 }
 0x31b   :  { %391 = vpow2.f32 %v379_v42 }
 0x321   :  { %v392_v43 = vpop.eup %391 }
 0x322   :  { %v248_v44 = vadd.f32 1.0, %v392_v43 }
 0x324   :  { %393 = vrcp.f32 %v248_v44  ;;  %v260_v48 = vand.u32 2147483648, %v248_v44  ;;  %v258_v50 = vand.u32 2147483647, %v248_v44  ;;  %vm254_vm8 = vweird.f32 %v248_v44 }
 0x326   :  { %v261_v52 = vor.u32 1.1754944e-38, %v260_v48  ;;  %vm259_vm10 = vcmp.eq.f32.partialorder %v258_v50, 8.507059e+37 }
 0x32a   :  { %v394_v45 = vpop.eup %393 }
 0x32b   :  { %v250_v46 = vmul.f32 %v394_v45, %v248_v44  ;;  %vm255_vm7 = vweird.f32 %v394_v45 }
 0x32c   :  { %vm256_vm9 = vmor %vm254_vm8, %vm255_vm7 }
 0x32d   :  { %v251_v47 = vsub.f32 1.0, %v250_v46 }
 0x32f   :  { %v252_v49 = vmul.f32 %v394_v45, %v251_v47 }
 0x331   :  { %v253_v51 = vadd.f32 %v394_v45, %v252_v49 }
 0x333   :  { %v257_v53 = vsel %vm256_vm9, %v394_v45, %v253_v51 }
 0x334   :  { %v262_v54 = vsel %vm259_vm10, %v261_v52, %v257_v53 }
 0x335   :  { %381 = vmatmul.msk.f32.vlgmr.msra.gmra.mxu3 %vm185_vm6, %v262_v54 }
 0x3b8   :  { %v288_v60 = vpop.f32.mrf.mxu3 }
 0x3b9   :  { %382 = vmatpush.msk.msra.mxu0 %vm296_vm11, %v288_v60 }
 0x3ba   :  { %383 = vmatmul.msk.f32.vlgmr.msra.gmra.mxu0 %vm292_vm12, %v291_v59 }
 0x437   :  { %v317_v63 = vpop.f32.mrf.mxu0 }
 0x438   :  { %v320_v0 = vmul.f32 %v317_v63, %v571_v28 }
 0x43a   :  { %384 = vmatmul.msk.f32.vlgmr.msrb.gmra.mxu2 %vm131_vm3, %v320_v0 }
 0x4bd   :  { %v351_v2 = vpop.f32.mrf.mxu2 }
 0x4be   :  { %v352_v3 = vadd.f32 %v390_v1, %v351_v2 }
 0x4c0   :  { %354 = vst.msk [vmem:[#allocation2] sm:$0xff] %vm156_vm4, %v352_v3 }
 0x4c1   :  { %365 = dma.vmem_to_hbm [thread:$0]  %s361_s29, 128, %s363_s4, [#allocation3]  }
 0x4c2   :  { %419 = dma.done.wait [#allocation3], 128  }
 0x4c3   :  { %420 = vsyncadd [#allocation3], 4294967168 }
 0x4c4   :  { %370 = vsyncpa [#allocation3], 1 }

</bundles_post_ra>
